<compile_context>
chip_gen: v7x
topology: tpu7x:2x2x1
jax: 0.10.0
libtpu: 0.0.40
codegen_flags: <defaults>
</compile_context>

<pallas_src>
import jax
import jax.numpy as jnp
from jax.experimental import pallas as pl
from jax.experimental.pallas import tpu as pltpu


def _round_up(x, m):
    return ((x + m - 1) // m) * m


def mlp_kernel(x_ref, w1_ref, b1_ref, w2_ref, b2_ref, o_ref):
    # x:  (d_in, TB)        w1: (u_pad, d_in)    b1: (u_pad, 1)
    # w2: (o_rows, u_pad)   b2: (o_rows, 1)      o:  (o_rows, TB)
    h = jnp.dot(w1_ref[...], x_ref[...],
                preferred_element_type=jnp.float32,
                precision=jax.lax.Precision.HIGHEST) + b1_ref[...]
    h = jnp.maximum(h, 0.0)                       # ReLU 1 (VPU, full-lane)
    y = jnp.dot(w2_ref[...], h,
                preferred_element_type=jnp.float32,
                precision=jax.lax.Precision.HIGHEST) + b2_ref[...]
    o_ref[...] = jnp.maximum(y, 0.0)              # ReLU 2, lane-dense store


def prepare_mlp_params(w1, b1, w2, b2):
    """One-time (init-side) zero-padding of the PyTorch-layout parameters.

    w1: (units, d_in), b1: (units,), w2: (out, units), b2: (out,)
    Zero padding leaves the math unchanged; padded rows/cols are sliced away.
    """
    units, d_in = w1.shape
    out_dim = w2.shape[0]
    u_pad = _round_up(units, 128)     # contraction lanes of the 2nd matmul
    o_rows = _round_up(out_dim, 8)    # output sublanes (8-aligned skinny slab)

    w1_p = jnp.zeros((u_pad, d_in), jnp.float32).at[:units, :].set(w1)
    b1_p = jnp.zeros((u_pad, 1), jnp.float32).at[:units, 0].set(b1)
    w2_p = jnp.zeros((o_rows, u_pad), jnp.float32).at[:out_dim, :units].set(w2)
    b2_p = jnp.zeros((o_rows, 1), jnp.float32).at[:out_dim, 0].set(b2)
    return dict(w1=w1_p, b1=b1_p, w2=w2_p, b2=b2_p, d_in=d_in, out_dim=out_dim)


_MAX_TB = 4096  # lanes per grid step; ~2.5 MiB double-buffered << VMEM on all gens


def _choose_batch_tiling(batch):
    """Return (tb, b_pad) with tb | b_pad and tb a multiple of 128."""
    b_pad = _round_up(batch, 128)               # batch is the lane dimension
    if b_pad <= _MAX_TB:
        half = b_pad // 2
        if b_pad >= 512 and half % 128 == 0:    # >=2 steps -> v7x uses both TCs
            return half, b_pad
        return b_pad, b_pad                     # tiny batch: a single big step
    return _MAX_TB, _round_up(batch, _MAX_TB)


def mlp_pallas(x, params):
    """Forward pass ReLU(ReLU(x @ w1.T + b1) @ w2.T + b2), pre-padded params.

    x: (B, d_in) float32.  Returns (B, out_dim) float32.
    """
    B, d_in = x.shape
    assert d_in == params["d_in"]
    w1_p, b1_p = params["w1"], params["b1"]
    w2_p, b2_p = params["w2"], params["b2"]
    u_pad = w1_p.shape[0]
    o_rows = w2_p.shape[0]
    out_dim = params["out_dim"]

    tb, b_pad = _choose_batch_tiling(B)
    grid = (b_pad // tb,)

    # Feature-major (transposed) input so batch sits on the lane dimension and
    # the streamed x rows are contiguous in HBM.  Pad lanes only when needed.
    x_t = x.astype(jnp.float32).T                       # (d_in, B)
    if b_pad != B:
        x_t = jnp.pad(x_t, ((0, 0), (0, b_pad - B)))

    out_t = pl.pallas_call(
        mlp_kernel,
        out_shape=jax.ShapeDtypeStruct((o_rows, b_pad), jnp.float32),
        grid=grid,
        in_specs=[
            pl.BlockSpec((d_in, tb), lambda i: (0, i)),      # x:  streamed
            pl.BlockSpec((u_pad, d_in), lambda i: (0, 0)),   # w1: resident
            pl.BlockSpec((u_pad, 1), lambda i: (0, 0)),      # b1: resident
            pl.BlockSpec((o_rows, u_pad), lambda i: (0, 0)), # w2: resident
            pl.BlockSpec((o_rows, 1), lambda i: (0, 0)),     # b2: resident
        ],
        out_specs=pl.BlockSpec((o_rows, tb), lambda i: (0, i)),
        compiler_params=pltpu.CompilerParams(
            dimension_semantics=("parallel",)),
    )(x_t, w1_p, b1_p, w2_p, b2_p)

    # Drop sublane padding (rows >= out_dim) and lane padding (cols >= B).
    return out_t[:out_dim, :B].T


if __name__ == "__main__":
    # Small shapes consistent with the module:
    #   num_inputs = X.shape[1] -> 16 ; units = 100 (module default) ; num_outputs = 1
    batch, num_inputs, units, num_outputs = 8, 16, 100, 1

    key = jax.random.PRNGKey(0)
    kx, kw1, kb1, kw2, kb2 = jax.random.split(key, 5)

    x = jax.random.normal(kx, (batch, num_inputs), dtype=jnp.float32)

    # PyTorch nn.Linear stores weight as (out_features, in_features).
    w1 = jax.random.normal(kw1, (units, num_inputs), dtype=jnp.float32) * 0.1
    b1 = jax.random.normal(kb1, (units,), dtype=jnp.float32) * 0.1
    w2 = jax.random.normal(kw2, (num_outputs, units), dtype=jnp.float32) * 0.1
    b2 = jax.random.normal(kb2, (num_outputs,), dtype=jnp.float32) * 0.1

    params = prepare_mlp_params(w1, b1, w2, b2)     # one-time, init-side
    out = jax.block_until_ready(mlp_pallas(x, params))

    # Pure-JAX f32 reference (same math as the PyTorch forward pass).
    hi = jax.lax.Precision.HIGHEST
    ref_h = jnp.maximum(jnp.dot(x, w1.T, precision=hi) + b1, 0.0)
    ref = jnp.maximum(jnp.dot(ref_h, w2.T, precision=hi) + b2, 0.0)

    assert out.shape == (batch, num_outputs)
    assert jnp.allclose(out, ref, atol=1e-5, rtol=1e-5), float(
        jnp.max(jnp.abs(out - ref)))

    print("KERNEL_OK")
</pallas_src>

<mosaic_0001>
module attributes {stable_mosaic.version = 11 : i64} {
  func.func @mlp_kernel(%arg0: i32, %arg1: memref<16x128xf32, #tpu.memory_space<vmem>>, %arg2: memref<128x16xf32, #tpu.memory_space<vmem>>, %arg3: memref<128x1xf32, #tpu.memory_space<vmem>>, %arg4: memref<8x128xf32, #tpu.memory_space<vmem>>, %arg5: memref<8x1xf32, #tpu.memory_space<vmem>>, %arg6: memref<8x128xf32, #tpu.memory_space<vmem>>) attributes {dimension_semantics = [#tpu.dimension_semantics<parallel>], iteration_bounds = array<i64: 1>, scalar_prefetch = 0 : i64, scratch_operands = 0 : i64, tpu.core_type = #tpu.core_type<tc>, window_params = [{transform_indices = @transform_0, window_bounds = array<i64: 16, 128>}, {pipeline_mode = #tpu.pipeline_mode<synchronous>, transform_indices = @transform_1, window_bounds = array<i64: 128, 16>}, {pipeline_mode = #tpu.pipeline_mode<synchronous>, transform_indices = @transform_2, window_bounds = array<i64: 128, 1>}, {pipeline_mode = #tpu.pipeline_mode<synchronous>, transform_indices = @transform_3, window_bounds = array<i64: 8, 128>}, {pipeline_mode = #tpu.pipeline_mode<synchronous>, transform_indices = @transform_4, window_bounds = array<i64: 8, 1>}, {transform_indices = @transform_5, window_bounds = array<i64: 8, 128>}]} {
    %c0 = arith.constant 0 : index
    %c0_0 = arith.constant 0 : index
    %0 = vector.load %arg2[%c0, %c0_0] : memref<128x16xf32, #tpu.memory_space<vmem>>, vector<128x16xf32>
    %c0_1 = arith.constant 0 : index
    %c0_2 = arith.constant 0 : index
    %1 = vector.load %arg1[%c0_1, %c0_2] : memref<16x128xf32, #tpu.memory_space<vmem>>, vector<16x128xf32>
    %cst = arith.constant dense<0.000000e+00> : vector<128x128xf32>
    %2 = tpu.matmul %0, %1, %cst {dimension_numbers = #tpu.dot_dimension_numbers<[1], [0], [0], [1], [0, 0, 1, 1], [], []>, precision = #tpu.contract_precision<fp32>} : vector<128x16xf32>, vector<16x128xf32>, vector<128x128xf32> -> vector<128x128xf32>
    %c0_3 = arith.constant 0 : index
    %c0_4 = arith.constant 0 : index
    %3 = vector.load %arg3[%c0_3, %c0_4] : memref<128x1xf32, #tpu.memory_space<vmem>>, vector<128x1xf32>
    %4 = vector.broadcast %3 : vector<128x1xf32> to vector<128x128xf32>
    %5 = arith.addf %2, %4 : vector<128x128xf32>
    %cst_5 = arith.constant 0.000000e+00 : f32
    %6 = vector.broadcast %cst_5 : f32 to vector<128x128xf32>
    %7 = arith.maximumf %5, %6 : vector<128x128xf32>
    %c0_6 = arith.constant 0 : index
    %c0_7 = arith.constant 0 : index
    %8 = vector.load %arg4[%c0_6, %c0_7] : memref<8x128xf32, #tpu.memory_space<vmem>>, vector<8x128xf32>
    %cst_8 = arith.constant dense<0.000000e+00> : vector<8x128xf32>
    %9 = tpu.matmul %8, %7, %cst_8 {dimension_numbers = #tpu.dot_dimension_numbers<[1], [0], [0], [1], [0, 0, 1, 1], [], []>, precision = #tpu.contract_precision<fp32>} : vector<8x128xf32>, vector<128x128xf32>, vector<8x128xf32> -> vector<8x128xf32>
    %c0_9 = arith.constant 0 : index
    %c0_10 = arith.constant 0 : index
    %10 = vector.load %arg5[%c0_9, %c0_10] : memref<8x1xf32, #tpu.memory_space<vmem>>, vector<8x1xf32>
    %11 = vector.broadcast %10 : vector<8x1xf32> to vector<8x128xf32>
    %12 = arith.addf %9, %11 : vector<8x128xf32>
    %cst_11 = arith.constant 0.000000e+00 : f32
    %13 = vector.broadcast %cst_11 : f32 to vector<8x128xf32>
    %14 = arith.maximumf %12, %13 : vector<8x128xf32>
    %c0_12 = arith.constant 0 : index
    %c0_13 = arith.constant 0 : index
    %15 = vector.load %arg6[%c0_12, %c0_13] : memref<8x128xf32, #tpu.memory_space<vmem>>, vector<8x128xf32>
    tpu.vector_store %arg6[%c0_12, %c0_13], %14 {strides = array<i32>} : memref<8x128xf32, #tpu.memory_space<vmem>>, vector<8x128xf32>,
    return
  }
  func.func @transform_0(%arg0: i32) -> (i32, i32) {
    %c0_i32 = arith.constant 0 : i32
    %c0_i32_0 = arith.constant 0 : i32
    return %c0_i32, %arg0 : i32, i32
  }
  func.func @transform_1(%arg0: i32) -> (i32, i32) {
    %c0_i32 = arith.constant 0 : i32
    %c0_i32_0 = arith.constant 0 : i32
    %c0_i32_1 = arith.constant 0 : i32
    return %c0_i32, %c0_i32_0 : i32, i32
  }
  func.func @transform_2(%arg0: i32) -> (i32, i32) {
    %c0_i32 = arith.constant 0 : i32
    %c0_i32_0 = arith.constant 0 : i32
    %c0_i32_1 = arith.constant 0 : i32
    return %c0_i32, %c0_i32_0 : i32, i32
  }
  func.func @transform_3(%arg0: i32) -> (i32, i32) {
    %c0_i32 = arith.constant 0 : i32
    %c0_i32_0 = arith.constant 0 : i32
    %c0_i32_1 = arith.constant 0 : i32
    return %c0_i32, %c0_i32_0 : i32, i32
  }
  func.func @transform_4(%arg0: i32) -> (i32, i32) {
    %c0_i32 = arith.constant 0 : i32
    %c0_i32_0 = arith.constant 0 : i32
    %c0_i32_1 = arith.constant 0 : i32
    return %c0_i32, %c0_i32_0 : i32, i32
  }
  func.func @transform_5(%arg0: i32) -> (i32, i32) {
    %c0_i32 = arith.constant 0 : i32
    %c0_i32_0 = arith.constant 0 : i32
    return %c0_i32, %arg0 : i32, i32
  }
}

</mosaic_0001>

<bundles_post_ra>
// kernel: tpu_custom_call.1
= control target key start
LH: loop header
LB: loop body
LE: loop exit
PB: predicated region body
PF: predicated region fallthrough
CT: control target
= control target key end

     0   :  { %vm135_vm0 = vcmask 130048   ;;  %s3577_s0 = inlined_call_operand.vmem [shape: f32[16,128], index: 0, kind: input, shape index: {}]   ;;  %s3578_s1 = inlined_call_operand.vmem [shape: f32[128,16], index: 1, kind: input, shape index: {}]   ;;  %s3579_s2 = inlined_call_operand.vmem [shape: f32[128,1], index: 2, kind: input, shape index: {}]   ;;  %s3580_s3 = inlined_call_operand.vmem [shape: f32[8,128], index: 3, kind: input, shape index: {}]   ;;  %s3581_s4 = inlined_call_operand.vmem [shape: f32[8,1], index: 4, kind: input, shape index: {}]   ;;  %s3582_s5 = inlined_call_operand.hbm [shape: f32[8,128], index: 5, kind: output, shape index: {}]  }
   0x1   :  { %v37_v0 = vld [vmem:[%s3577_s0] sm:$0xff]  ;;  %v38_v1 = vld [vmem:[%s3577_s0 + $0x8] sm:$0xff]  ;;  %v23_v7 = vld [vmem:[%s3578_s1 + $0x10] sm:$0xff] }
   0x2   :  { %v21_v2 = vld [vmem:[%s3578_s1] sm:$0xff]  ;;  %v185_v3 = vand.u32 4294901760, %v37_v0  ;;  %v188_v4 = vand.u32 4294901760, %v38_v1  ;;  %v22_v6 = vld [vmem:[%s3578_s1 + $0x8] sm:$0xff]  ;;  %v24_v8 = vld [vmem:[%s3578_s1 + $0x18] sm:$0xff]  ;;  %v143_v11 = vsel %vm135_vm0, %v23_v7, 0 }
   0x3   :  { %v137_v5 = vsel %vm135_vm0, %v21_v2, 0  ;;  %v140_v10 = vsel %vm135_vm0, %v22_v6, 0  ;;  %v146_v12 = vsel %vm135_vm0, %v24_v8, 0  ;;  %v25_v13 = vld [vmem:[%s3578_s1 + $0x20] sm:$0xff]  ;;  %v26_v18 = vld [vmem:[%s3578_s1 + $0x28] sm:$0xff]  ;;  %v2938_v20 = vand.u32 4294901760, %v143_v11 }
   0x4   :  { %v2916_v9 = vand.u32 4294901760, %v137_v5  ;;  %v2924_v14 = vpack.c.bf16 %v188_v4, %v185_v3  ;;  %v2926_v15 = vand.u32 4294901760, %v140_v10  ;;  %v2928_v16 = vsub.f32 %v37_v0, %v185_v3 }
   0x5   :  { %v2930_v17 = vsub.f32 %v38_v1, %v188_v4  ;;  %v2940_v21 = vand.u32 4294901760, %v146_v12  ;;  %v149_v22 = vsel %vm135_vm0, %v25_v13, 0  ;;  %v2954_v28 = vsub.f32 %v143_v11, %v2938_v20 }
   0x6   :  { %v2936_v19 = vsub.f32 %v137_v5, %v2916_v9  ;;  %2557 = vmatprep.subr.bf16.mxu0 %v2924_v14  ;;  %v2945_v23 = vsub.f32 %v140_v10, %v2926_v15  ;;  %v414_v24 = vand.u32 4294901760, %v2928_v16  ;;  %v2949_v26 = vand.u32 4294901760, %v149_v22 }
   0x7   :  { %v421_v25 = vand.u32 4294901760, %v2930_v17  ;;  %2559 = vmatpush3.bf16.msra.mxu0 %v2924_v14  ;;  %v2957_v29 = vsub.f32 %v146_v12, %v2940_v21  ;;  %v152_v30 = vsel %vm135_vm0, %v26_v18, 0 }
   0x8   :  { %v253_v27 = vand.u32 4294901760, %v2936_v19 }
   0x9   :  { %10 = vsyncpa [#allocation3], 0  ;;  %v263_v31 = vand.u32 4294901760, %v2945_v23  ;;  %v415_v32 = vsub.f32 %v2928_v16, %v414_v24  ;;  %v422_v33 = vsub.f32 %v2930_v17, %v421_v25  ;;  %v2968_v34 = vsub.f32 %v149_v22, %v2949_v26  ;;  %v27_v39 = vld [vmem:[%s3578_s1 + $0x30] sm:$0xff]  ;;  %v28_v48 = vld [vmem:[%s3578_s1 + $0x38] sm:$0xff] }
   0xa   :  { %v254_v35 = vsub.f32 %v2936_v19, %v253_v27  ;;  %v273_v36 = vand.u32 4294901760, %v2954_v28  ;;  %v283_v37 = vand.u32 4294901760, %v2957_v29  ;;  %v2975_v38 = vand.u32 4294901760, %v152_v30  ;;  %v29_v49 = vld [vmem:[%s3578_s1 + $0x40] sm:$0xff]  ;;  %v30_v50 = vld [vmem:[%s3578_s1 + $0x48] sm:$0xff]  ;;  %v31_v55 = vld [vmem:[%s3578_s1 + $0x50] sm:$0xff] }
   0xb   :  { %v264_v40 = vsub.f32 %v2945_v23, %v263_v31  ;;  %v416_v41 = vand.u32 4294901760, %v415_v32  ;;  %v423_v42 = vand.u32 4294901760, %v422_v33  ;;  %v293_v43 = vand.u32 4294901760, %v2968_v34  ;;  %v32_v60 = vld [vmem:[%s3578_s1 + $0x58] sm:$0xff]  ;;  %v33_v61 = vld [vmem:[%s3578_s1 + $0x60] sm:$0xff]  ;;  %v34_v11 = vld [vmem:[%s3578_s1 + $0x68] sm:$0xff] }
   0xc   :  { %v255_v44 = vand.u32 4294901760, %v254_v35  ;;  %v274_v45 = vsub.f32 %v2954_v28, %v273_v36  ;;  %v284_v46 = vsub.f32 %v2957_v29, %v283_v37  ;;  %v2991_v47 = vsub.f32 %v152_v30, %v2975_v38 }
   0xd   :  { %v265_v51 = vand.u32 4294901760, %v264_v40  ;;  %v2560_v52 = vpack.c.bf16 %v423_v42, %v416_v41  ;;  %v294_v53 = vsub.f32 %v2968_v34, %v293_v43  ;;  %v155_v54 = vsel %vm135_vm0, %v27_v39, 0 }
   0xe   :  { %2182 = vmatprep.mubr.f32.mxu0 %v255_v44  ;;  %v275_v56 = vand.u32 4294901760, %v274_v45  ;;  %v285_v57 = vand.u32 4294901760, %v284_v46  ;;  %v303_v58 = vand.u32 4294901760, %v2991_v47  ;;  %v3010_v59 = vand.u32 4294901760, %v155_v54 }
   0xf   :  { %2183 = vmatmul.mubr.f32.vlgmr.msra.gmra.mrb[0].mxu0 %v265_v51  ;;  %2561 = vmatprep.subr.bf16.mxu0 %v2560_v52  ;;  %v295_v62 = vand.u32 4294901760, %v294_v53  ;;  %v158_v63 = vsel %vm135_vm0, %v28_v48, 0  ;;  %v161_v0 = vsel %vm135_vm0, %v29_v49, 0  ;;  %v164_v1 = vsel %vm135_vm0, %v30_v50, 0  ;;  %v35_v49 = vld [vmem:[%s3578_s1 + $0x70] sm:$0xff] }
  0x10   :  { %2563 = vmatpush3.bf16.msra.mxu0 %v2560_v52  ;;  %2185 = vmatprep.mubr.f32.mxu0 %v275_v56  ;;  %v304_v2 = vsub.f32 %v2991_v47, %v303_v58  ;;  %v3025_v3 = vsub.f32 %v155_v54, %v3010_v59  ;;  %v3027_v4 = vand.u32 4294901760, %v158_v63  ;;  %v3029_v5 = vand.u32 4294901760, %v161_v0 }
  0x11   :  { %v3031_v6 = vand.u32 4294901760, %v164_v1  ;;  %v167_v7 = vsel %vm135_vm0, %v31_v55, 0  ;;  %v170_v8 = vsel %vm135_vm0, %v32_v60, 0  ;;  %v173_v10 = vsel %vm135_vm0, %v33_v61, 0  ;;  %v36_v60 = vld [vmem:[%s3578_s1 + $0x78] sm:$0xff] }
  0x12   :  { %v305_v12 = vand.u32 4294901760, %v304_v2  ;;  %v313_v13 = vand.u32 4294901760, %v3025_v3  ;;  %v3041_v18 = vsub.f32 %v158_v63, %v3027_v4  ;;  %v3044_v22 = vsub.f32 %v161_v0, %v3029_v5 }
  0x13   :  { %2186 = vmatmul.mubr.f32.gmra.mrb[2].mxu0 %v285_v57  ;;  %v3047_v30 = vsub.f32 %v164_v1, %v3031_v6  ;;  %v3049_v32 = vand.u32 4294901760, %v167_v7  ;;  %v3051_v33 = vand.u32 4294901760, %v170_v8  ;;  %v3053_v35 = vand.u32 4294901760, %v173_v10 }
  0x14   :  { %2188 = vmatprep.mubr.f32.mxu0 %v295_v62  ;;  %v314_v39 = vsub.f32 %v3025_v3, %v313_v13  ;;  %v323_v40 = vand.u32 4294901760, %v3041_v18  ;;  %v333_v41 = vand.u32 4294901760, %v3044_v22  ;;  %v176_v42 = vsel %vm135_vm0, %v34_v11, 0 }
  0x15   :  { %v343_v44 = vand.u32 4294901760, %v3047_v30  ;;  %v3063_v45 = vsub.f32 %v167_v7, %v3049_v32  ;;  %v3066_v46 = vsub.f32 %v170_v8, %v3051_v33  ;;  %v3069_v48 = vsub.f32 %v173_v10, %v3053_v35 }
  0x16   :  { %v315_v50 = vand.u32 4294901760, %v314_v39  ;;  %v324_v51 = vsub.f32 %v3041_v18, %v323_v40  ;;  %v334_v52 = vsub.f32 %v3044_v22, %v333_v41  ;;  %v3080_v53 = vand.u32 4294901760, %v176_v42 }
  0x17   :  { %2189 = vmatmul.mubr.f32.gmra.mrb[4].mxu0 %v305_v12  ;;  %v344_v54 = vsub.f32 %v3047_v30, %v343_v44  ;;  %v353_v55 = vand.u32 4294901760, %v3063_v45  ;;  %v363_v56 = vand.u32 4294901760, %v3066_v46  ;;  %v373_v57 = vand.u32 4294901760, %v3069_v48 }
  0x18   :  { %2191 = vmatprep.mubr.f32.mxu0 %v315_v50  ;;  %v325_v61 = vand.u32 4294901760, %v324_v51  ;;  %v335_v62 = vand.u32 4294901760, %v334_v52  ;;  %v3092_v63 = vsub.f32 %v176_v42, %v3080_v53  ;;  %v179_v0 = vsel %vm135_vm0, %v35_v49, 0 }
  0x19   :  { %v354_v1 = vsub.f32 %v3063_v45, %v353_v55  ;;  %v3098_v2 = vand.u32 4294901760, %v179_v0  ;;  %v182_v7 = vsel %vm135_vm0, %v36_v60, 0  ;;  %v2564_v8 = vpack.c.bf16 %v2930_v17, %v2928_v16 }
  0x1a   :  { %v345_v10 = vand.u32 4294901760, %v344_v54  ;;  %v364_v11 = vsub.f32 %v3066_v46, %v363_v56  ;;  %v383_v12 = vand.u32 4294901760, %v3092_v63  ;;  %v3107_v39 = vand.u32 4294901760, %v182_v7 }
  0x1b   :  { %2192 = vmatmul.mubr.f32.gmra.mrb[6].mxu0 %v325_v61  ;;  %v355_v42 = vand.u32 4294901760, %v354_v1  ;;  %v374_v49 = vsub.f32 %v3069_v48, %v373_v57  ;;  %v3113_v50 = vsub.f32 %v179_v0, %v3098_v2  ;;  %2565 = vmatprep.subr.bf16.mxu0 %v2564_v8  ;;  %v3119_v51 = vpack.c.bf16 %v421_v25, %v414_v24 }
  0x1c   :  { %2194 = vmatprep.mubr.f32.mxu0 %v335_v62  ;;  %v3122_v52 = vsub.f32 %v182_v7, %v3107_v39  ;;  %v365_v60 = vand.u32 4294901760, %v364_v11  ;;  %v384_v61 = vsub.f32 %v3092_v63, %v383_v12  ;;  %v39_v7 = vld [vmem:[%s3579_s2] sm:$0xff]  ;;  %v40_v11 = vld [vmem:[%s3579_s2 + $0x8] sm:$0xff]  ;;  %vm2864_vm1 = vmmov 0  }
  0x1d   :  { %v393_v54 = vand.u32 4294901760, %v3113_v50  ;;  %v375_v0 = vand.u32 4294901760, %v374_v49  ;;  %v43_v49 = vld [vmem:[%s3579_s2 + $0x20] sm:$0xff] }
  0x1e   :  { %v403_v62 = vand.u32 4294901760, %v3122_v52  ;;  %v385_v17 = vand.u32 4294901760, %v384_v61  ;;  %v45_v61 = vld [vmem:[%s3579_s2 + $0x30] sm:$0xff] }
  0x1f   :  { %2195 = vmatmul.mubr.f32.gmra.mrb[8].mxu0 %v345_v10  ;;  %v394_v16 = vsub.f32 %v3113_v50, %v393_v54  ;;  %v2862_v10 = vmov 0  }
  0x20   :  { %2197 = vmatprep.mubr.f32.mxu0 %v355_v42  ;;  %v404_v24 = vsub.f32 %v3122_v52, %v403_v62  ;;  %2836 = vset.pattern.permute.xlu0 %v2862_v10  ;;  %v42_v42 = vld [vmem:[%s3579_s2 + $0x18] sm:$0xff] }
  0x21   :  { %v395_v25 = vand.u32 4294901760, %v394_v16  ;;  %57 = vperm.xlu0 %2836, %v39_v7   ;;  %2837 = vset.pattern.permute.xlu1 %v2862_v10  ;;  %v47_v16 = vld [vmem:[%s3579_s2 + $0x40] sm:$0xff]  ;;  %v52_v7 = vld [vmem:[%s3579_s2 + $0x68] sm:$0xff]  ;;  %v54_v10 = vld [vmem:[%s3579_s2 + $0x78] sm:$0xff] }
  0x22   :  { %v405_v1 = vand.u32 4294901760, %v404_v24  ;;  %v49_v24 = vld [vmem:[%s3579_s2 + $0x50] sm:$0xff] }
  0x23   :  { %2198 = vmatmul.mubr.f32.gmra.mrb[10].mxu0 %v365_v60  ;;  %v44_v60 = vld [vmem:[%s3579_s2 + $0x28] sm:$0xff] }
  0x24   :  { %2200 = vmatprep.mubr.f32.mxu0 %v375_v0  ;;  %v46_v0 = vld [vmem:[%s3579_s2 + $0x38] sm:$0xff] }
  0x25   :  { %62 = vperm.xlu0 %2836, %v40_v11   ;;  %v1305_v11 = vld [vmem:[%s3581_s4] sm:$0xff] }
  0x27   :  { %2201 = vmatmul.mubr.f32.gmra.mrb[12].mxu0 %v385_v17  ;;  %v48_v17 = vld [vmem:[%s3579_s2 + $0x48] sm:$0xff] }
  0x28   :  { %2203 = vmatprep.mubr.f32.mxu0 %v395_v25  ;;  %v50_v25 = vld [vmem:[%s3579_s2 + $0x58] sm:$0xff] }
  0x29   :  { %77 = vperm.xlu0 %2836, %v43_v49  }
  0x2b   :  { %2204 = vmatmul.mubr.f32.gmra.mrb[14].mxu0 %v405_v1  ;;  %v51_v1 = vld [vmem:[%s3579_s2 + $0x60] sm:$0xff] }
  0x2c   :  { %2210 = vmatprep.mubr.f32.mxu0 %v2916_v9 }
  0x2d   :  { %87 = vperm.xlu0 %2836, %v45_v61  }
  0x2f   :  { %2211 = vmatmul.mubr.f32.vlgmr.msra.gmra.mrb[0].mxu0 %v2926_v15 }
  0x30   :  { %2567 = vmatpush3.bf16.msra.mxu0 %v2564_v8  ;;  %2213 = vmatprep.mubr.f32.mxu0 %v2938_v20  ;;  %v41_v8 = vld [vmem:[%s3579_s2 + $0x10] sm:$0xff] }
  0x31   :  { %2569 = vmatprep.subr.bf16.mxu0 %v2924_v14  ;;  %67 = vperm.xlu1 %2837, %v41_v8   ;;  %v53_v8 = vld [vmem:[%s3579_s2 + $0x70] sm:$0xff] }
  0x32   :  { %97 = vperm.xlu0 %2836, %v47_v16  }
  0x33   :  { %2214 = vmatmul.mubr.f32.gmra.mrb[2].mxu0 %v2940_v21 }
  0x34   :  { %2216 = vmatprep.mubr.f32.mxu0 %v2949_v26 }
  0x35   :  { %72 = vperm.xlu1 %2837, %v42_v42  }
  0x36   :  { %107 = vperm.xlu0 %2836, %v49_v24  }
  0x37   :  { %2217 = vmatmul.mubr.f32.gmra.mrb[4].mxu0 %v2975_v38 }
  0x38   :  { %2219 = vmatprep.mubr.f32.mxu0 %v3010_v59 }
  0x39   :  { %82 = vperm.xlu1 %2837, %v44_v60  }
  0x3a   :  { %117 = vperm.xlu0 %2836, %v51_v1  }
  0x3b   :  { %2220 = vmatmul.mubr.f32.gmra.mrb[6].mxu0 %v3027_v4 }
  0x3c   :  { %2222 = vmatprep.mubr.f32.mxu0 %v3029_v5 }
  0x3d   :  { %92 = vperm.xlu1 %2837, %v46_v0  }
  0x3e   :  { %127 = vperm.xlu0 %2836, %v53_v8  }
  0x3f   :  { %2223 = vmatmul.mubr.f32.gmra.mrb[8].mxu0 %v3031_v6 }
  0x40   :  { %2225 = vmatprep.mubr.f32.mxu0 %v3049_v32 }
  0x41   :  { %102 = vperm.xlu1 %2837, %v48_v17  }
  0x42   :  { %1308 = vperm.xlu0 %2836, %v1305_v11  }
  0x43   :  { %2226 = vmatmul.mubr.f32.gmra.mrb[10].mxu0 %v3051_v33 }
  0x44   :  { %2228 = vmatprep.mubr.f32.mxu0 %v3053_v35 }
  0x45   :  { %112 = vperm.xlu1 %2837, %v50_v25  }
  0x47   :  { %2229 = vmatmul.mubr.f32.gmra.mrb[12].mxu0 %v3080_v53 }
  0x48   :  { %2231 = vmatprep.mubr.f32.mxu0 %v3098_v2 }
  0x49   :  { %122 = vperm.xlu1 %2837, %v52_v7  }
  0x4b   :  { %2232 = vmatmul.mubr.f32.gmra.mrb[14].mxu0 %v3107_v39 }
  0x4c   :  { %2238 = vmatprep.mubr.f32.mxu0 %v2936_v19 }
  0x4d   :  { %132 = vperm.xlu1 %2837, %v54_v10  }
  0x4f   :  { %2239 = vmatmul.mubr.f32.vlgmr.msra.gmra.mrb[0].mxu0 %v2945_v23 }
  0x50   :  { %2571 = vmatpush3.bf16.msra.mxu0 %v2924_v14  ;;  %2241 = vmatprep.mubr.f32.mxu0 %v2954_v28 }
  0x51   :  { %2573 = vmatprep.subr.bf16.mxu0 %v3119_v51 }
  0x53   :  { %2242 = vmatmul.mubr.f32.gmra.mrb[2].mxu0 %v2957_v29 }
  0x54   :  { %2244 = vmatprep.mubr.f32.mxu0 %v2968_v34 }
  0x57   :  { %2245 = vmatmul.mubr.f32.gmra.mrb[4].mxu0 %v2991_v47 }
  0x58   :  { %2247 = vmatprep.mubr.f32.mxu0 %v3025_v3 }
  0x5b   :  { %2248 = vmatmul.mubr.f32.gmra.mrb[6].mxu0 %v3041_v18 }
  0x5c   :  { %2250 = vmatprep.mubr.f32.mxu0 %v3044_v22 }
  0x5f   :  { %2251 = vmatmul.mubr.f32.gmra.mrb[8].mxu0 %v3047_v30 }
  0x60   :  { %2253 = vmatprep.mubr.f32.mxu0 %v3063_v45 }
  0x63   :  { %2254 = vmatmul.mubr.f32.gmra.mrb[10].mxu0 %v3066_v46 }
  0x64   :  { %2256 = vmatprep.mubr.f32.mxu0 %v3069_v48 }
  0x67   :  { %2257 = vmatmul.mubr.f32.gmra.mrb[12].mxu0 %v3092_v63 }
  0x68   :  { %2259 = vmatprep.mubr.f32.mxu0 %v3113_v50 }
  0x6b   :  { %2260 = vmatmul.mubr.f32.gmra.mrb[14].mxu0 %v3122_v52 }
  0x6c   :  { %2266 = vmatprep.mubr.f32.mxu0 %v253_v27 }
  0x6f   :  { %2267 = vmatmul.mubr.f32.vlgmr.msra.gmra.mrb[0].mxu0 %v263_v31 }
  0x70   :  { %2575 = vmatpush3.bf16.msra.mxu0 %v3119_v51  ;;  %2269 = vmatprep.mubr.f32.mxu0 %v273_v36 }
  0x71   :  { %2577 = vmatprep.subr.bf16.mxu0 %v2924_v14 }
  0x73   :  { %2270 = vmatmul.mubr.f32.gmra.mrb[2].mxu0 %v283_v37 }
  0x74   :  { %2272 = vmatprep.mubr.f32.mxu0 %v293_v43 }
  0x77   :  { %2273 = vmatmul.mubr.f32.gmra.mrb[4].mxu0 %v303_v58 }
  0x78   :  { %2275 = vmatprep.mubr.f32.mxu0 %v313_v13 }
  0x7b   :  { %2276 = vmatmul.mubr.f32.gmra.mrb[6].mxu0 %v323_v40 }
  0x7c   :  { %2278 = vmatprep.mubr.f32.mxu0 %v333_v41 }
  0x7f   :  { %2279 = vmatmul.mubr.f32.gmra.mrb[8].mxu0 %v343_v44 }
  0x80   :  { %2281 = vmatprep.mubr.f32.mxu0 %v353_v55 }
  0x83   :  { %2282 = vmatmul.mubr.f32.gmra.mrb[10].mxu0 %v363_v56 }
  0x84   :  { %2284 = vmatprep.mubr.f32.mxu0 %v373_v57 }
  0x87   :  { %2285 = vmatmul.mubr.f32.gmra.mrb[12].mxu0 %v383_v12 }
  0x88   :  { %2287 = vmatprep.mubr.f32.mxu0 %v393_v54 }
  0x8b   :  { %2288 = vmatmul.mubr.f32.gmra.mrb[14].mxu0 %v403_v62 }
  0x8c   :  { %2294 = vmatprep.mubr.f32.mxu0 %v2916_v9 }
  0x8f   :  { %2295 = vmatmul.mubr.f32.vlgmr.msra.gmra.mrb[0].mxu0 %v2926_v15 }
  0x90   :  { %2579 = vmatpush3.bf16.msra.mxu0 %v2924_v14  ;;  %2297 = vmatprep.mubr.f32.mxu0 %v2938_v20  ;;  %v3584_v14 = vmov 0.0  }
  0x91   :  { %2378 = vmatprep.mubr.msk.f32.mxu1 %vm2864_vm1, %v3584_v14 }
  0x93   :  { %2298 = vmatmul.mubr.f32.gmra.mrb[2].mxu0 %v2940_v21 }
  0x94   :  { %2300 = vmatprep.mubr.f32.mxu0 %v2949_v26 }
  0x97   :  { %2301 = vmatmul.mubr.f32.gmra.mrb[4].mxu0 %v2975_v38 }
  0x98   :  { %2303 = vmatprep.mubr.f32.mxu0 %v3010_v59 }
  0x9b   :  { %2304 = vmatmul.mubr.f32.gmra.mrb[6].mxu0 %v3027_v4 }
  0x9c   :  { %2306 = vmatprep.mubr.f32.mxu0 %v3029_v5 }
  0x9f   :  { %2307 = vmatmul.mubr.f32.gmra.mrb[8].mxu0 %v3031_v6 }
  0xa0   :  { %2309 = vmatprep.mubr.f32.mxu0 %v3049_v32  ;;  %v58_v19 = vpop.permute.xlu0 %57 }
  0xa3   :  { %2310 = vmatmul.mubr.f32.gmra.mrb[10].mxu0 %v3051_v33 }
  0xa4   :  { %2312 = vmatprep.mubr.f32.mxu0 %v3053_v35  ;;  %v63_v23 = vpop.permute.xlu0 %62 }
  0xa7   :  { %2313 = vmatmul.mubr.f32.gmra.mrb[12].mxu0 %v3080_v53 }
  0xa8   :  { %2315 = vmatprep.mubr.f32.mxu0 %v3098_v2  ;;  %v78_v28 = vpop.permute.xlu0 %77 }
  0xab   :  { %2316 = vmatmul.mubr.f32.gmra.mrb[14].mxu0 %v3107_v39 }
  0xac   :  { %2322 = vmatprep.mubr.f32.mxu0 %v2916_v9  ;;  %v2863_v9 = vmov 0.0|0.0   ;;  %v88_v3 = vpop.permute.xlu0 %87 }
  0xad   :  { %2580 = vmatprep.subr.bf16.mxu1 %v2863_v9 }
  0xaf   :  { %2323 = vmatmul.mubr.f32.vlgmr.msra.gmra.mrb[0].mxu0 %v2926_v15 }
  0xb0   :  { %2325 = vmatprep.mubr.f32.mxu0 %v2938_v20  ;;  %v68_v15 = vpop.permute.xlu1 %67 }
  0xb3   :  { %2326 = vmatmul.mubr.f32.gmra.mrb[2].mxu0 %v2940_v21  ;;  %v1304_v21 = vld [vmem:[%s3580_s3] sm:$0xff]  ;;  %s2866_s3 = smov [#allocation2]  }
  0xb4   :  { %2328 = vmatprep.mubr.f32.mxu0 %v2949_v26  ;;  %v73_v20 = vpop.permute.xlu1 %72  ;;  %v3294_v26 = vand.u32 4294901760, %v1304_v21  ;;  %s1960_s8 = sshll.u32 %s2866_s3, 4  ;;  %s1961_s8 = int_to_ptr.vmem [resolvable:$true] %s1960_s8 }
  0xb5   :  { %s2838_s9 = scalar_lea.vmem %s1961_s8, 128  ;;  %p2843_p1 = scmp.lt.s32.totalorder %s1961_s8, %s1961_s8 }
  0xb6   :  { %v3297_v29 = vsub.f32 %v1304_v21, %v3294_v26  ;;  %p2839_p0 = scmp.ne.s32.totalorder %s1961_s8, %s2838_s9  ;;  %p2844_p2 = scmp.lt.s32.totalorder %s2838_s9, %s2838_s9 }
  0xb7   :  { %2329 = vmatmul.mubr.f32.gmra.mrb[4].mxu0 %v2975_v38 }
  0xb8   :  { %2331 = vmatprep.mubr.f32.mxu0 %v3010_v59  ;;  %v83_v27 = vpop.permute.xlu1 %82  ;;  %v3583_v43 = vand.u32 4294901760, %v3297_v29  ;;  %p2845_p3 = por %p2844_p2, %p2843_p1 }
  0xba   :  { %p2846_p4 = pnand %p2845_p3, %p2839_p0 }
  0xbb   :  { %2332 = vmatmul.mubr.f32.gmra.mrb[6].mxu0 %v3027_v4 }
  0xbc   :  { %2334 = vmatprep.mubr.f32.mxu0 %v3029_v5  ;;  %v93_v47 = vpop.permute.xlu1 %92 }
  0xbf   :  { %2335 = vmatmul.mubr.f32.gmra.mrb[8].mxu0 %v3031_v6 }
  0xc0   :  { %2337 = vmatprep.mubr.f32.mxu0 %v3049_v32  ;;  %v3305_v32 = vsub.f32 %v3297_v29, %v3583_v43 }
  0xc3   :  { %2338 = vmatmul.mubr.f32.gmra.mrb[10].mxu0 %v3051_v33 }
  0xc4   :  { %2340 = vmatprep.mubr.f32.mxu0 %v3053_v35 }
  0xc7   :  { %2341 = vmatmul.mubr.f32.gmra.mrb[12].mxu0 %v3080_v53  ;;  %v103_v53 = vpop.permute.xlu1 %102 }
  0xc8   :  { %2343 = vmatprep.mubr.f32.mxu0 %v3098_v2  ;;  %v98_v2 = vpop.permute.xlu0 %97 }
  0xcb   :  { %2344 = vmatmul.mubr.f32.gmra.mrb[14].mxu0 %v3107_v39 }
 0x182   :  { %v2324_v31 = vpop.f32.mrb[0].mxu0 }
 0x183   :  { %v2724_v34 = vadd.f32 %v2324_v31, %v63_v23  ;;  %v1194_v36 = vpop.f32.mrb[1].mxu0  ;;  %v108_v31 = vpop.permute.xlu0 %107 }
 0x184   :  { %v2725_v37 = vadd.f32 %v1194_v36, %v58_v19  ;;  %v113_v19 = vpop.permute.xlu1 %112 }
 0x185   :  { %v1289_v38 = vmax.f32 %v2724_v34, 0.0 }
 0x186   :  { %v1288_v58 = vmax.f32 %v2725_v37, 0.0  ;;  %v2327_v59 = vpop.f32.mrb[2].mxu0 }
 0x187   :  { %v1315_v4 = vand.u32 4294901760, %v1289_v38  ;;  %v2726_v5 = vadd.f32 %v2327_v59, %v73_v20  ;;  %v1206_v6 = vpop.f32.mrb[3].mxu0 }
 0x188   :  { %v1312_v13 = vand.u32 4294901760, %v1288_v58  ;;  %v2727_v18 = vadd.f32 %v1206_v6, %v68_v15 }
 0x189   :  { %v3300_v22 = vsub.f32 %v1289_v38, %v1315_v4  ;;  %v1291_v30 = vmax.f32 %v2726_v5, 0.0 }
 0x18a   :  { %v3307_v33 = vsub.f32 %v1288_v58, %v1312_v13  ;;  %v1290_v35 = vmax.f32 %v2727_v18, 0.0  ;;  %v2330_v40 = vpop.f32.mrb[4].mxu0  ;;  %v3309_v41 = vpack.c.bf16 %v1315_v4, %v1312_v13 }
 0x18b   :  { %v1412_v44 = vand.u32 4294901760, %v3300_v22  ;;  %v1321_v45 = vand.u32 4294901760, %v1291_v30  ;;  %v2728_v46 = vadd.f32 %v2330_v40, %v83_v27  ;;  %v1218_v48 = vpop.f32.mrb[5].mxu0 }
 0x18c   :  { %v1405_v55 = vand.u32 4294901760, %v3307_v33  ;;  %v1318_v56 = vand.u32 4294901760, %v1290_v35  ;;  %v2729_v57 = vadd.f32 %v1218_v48, %v78_v28  ;;  %2582 = vmatpush3.bf16.msra.mxu1 %v3309_v41 }
 0x18d   :  { %v1413_v12 = vsub.f32 %v3300_v22, %v1412_v44  ;;  %v3319_v39 = vsub.f32 %v1291_v30, %v1321_v45  ;;  %v1293_v50 = vmax.f32 %v2728_v46, 0.0  ;;  %2583 = vmatprep.subr.bf16.mxu1 %v2863_v9 }
 0x18e   :  { %v1406_v52 = vsub.f32 %v3307_v33, %v1405_v55  ;;  %v3326_v54 = vsub.f32 %v1290_v35, %v1318_v56  ;;  %v1292_v62 = vmax.f32 %v2729_v57, 0.0  ;;  %v2333_v42 = vpop.f32.mrb[6].mxu0  ;;  %v3328_v49 = vpack.c.bf16 %v1321_v45, %v1318_v56 }
 0x18f   :  { %v1414_v60 = vand.u32 4294901760, %v1413_v12  ;;  %v1426_v61 = vand.u32 4294901760, %v3319_v39  ;;  %v1327_v0 = vand.u32 4294901760, %v1293_v50  ;;  %v2730_v16 = vadd.f32 %v2333_v42, %v93_v47  ;;  %v1230_v17 = vpop.f32.mrb[7].mxu0  ;;  %v123_v12 = vpop.permute.xlu1 %122 }
 0x190   :  { %v1407_v24 = vand.u32 4294901760, %v1406_v52  ;;  %v1419_v25 = vand.u32 4294901760, %v3326_v54  ;;  %v1324_v1 = vand.u32 4294901760, %v1292_v62  ;;  %v2731_v7 = vadd.f32 %v1230_v17, %v88_v3  ;;  %2585 = vmatpush3.bf16.msra.mxu1 %v3328_v49 }
 0x191   :  { %v1427_v8 = vsub.f32 %v3319_v39, %v1426_v61  ;;  %v3336_v10 = vsub.f32 %v1293_v50, %v1327_v0  ;;  %v1295_v11 = vmax.f32 %v2730_v16, 0.0  ;;  %2586 = vmatprep.subr.bf16.mxu1 %v2863_v9 }
 0x192   :  { %v1420_v20 = vsub.f32 %v3326_v54, %v1419_v25  ;;  %v3344_v21 = vsub.f32 %v1292_v62, %v1324_v1  ;;  %v1294_v23 = vmax.f32 %v2731_v7, 0.0  ;;  %v2336_v27 = vpop.f32.mrb[8].mxu0  ;;  %v3346_v28 = vpack.c.bf16 %v1327_v0, %v1324_v1 }
 0x193   :  { %v1428_v34 = vand.u32 4294901760, %v1427_v8  ;;  %v1440_v36 = vand.u32 4294901760, %v3336_v10  ;;  %v1333_v37 = vand.u32 4294901760, %v1295_v11  ;;  %v2732_v38 = vadd.f32 %v2336_v27, %v103_v53  ;;  %v1242_v47 = vpop.f32.mrb[9].mxu0 }
 0x194   :  { %v1421_v58 = vand.u32 4294901760, %v1420_v20  ;;  %v1433_v59 = vand.u32 4294901760, %v3344_v21  ;;  %v1330_v3 = vand.u32 4294901760, %v1294_v23  ;;  %v2733_v4 = vadd.f32 %v1242_v47, %v98_v2  ;;  %2588 = vmatpush3.bf16.msra.mxu1 %v3346_v28 }
 0x195   :  { %v1441_v5 = vsub.f32 %v3336_v10, %v1440_v36  ;;  %v3354_v6 = vsub.f32 %v1295_v11, %v1333_v37  ;;  %v1297_v13 = vmax.f32 %v2732_v38, 0.0  ;;  %2589 = vmatprep.subr.bf16.mxu1 %v2863_v9  ;;  %v3357_v18 = vpack.c.bf16 %v1414_v60, %v1407_v24  ;;  %v118_v60 = vpop.permute.xlu0 %117 }
 0x196   :  { %v1434_v30 = vsub.f32 %v3344_v21, %v1433_v59  ;;  %v3362_v35 = vsub.f32 %v1294_v23, %v1330_v3  ;;  %v1296_v40 = vmax.f32 %v2733_v4, 0.0  ;;  %v2339_v45 = vpop.f32.mrb[10].mxu0  ;;  %v3364_v46 = vpack.c.bf16 %v1333_v37, %v1330_v3 }
 0x197   :  { %v1442_v48 = vand.u32 4294901760, %v1441_v5  ;;  %v1454_v53 = vand.u32 4294901760, %v3354_v6  ;;  %v1339_v56 = vand.u32 4294901760, %v1297_v13  ;;  %v2734_v57 = vadd.f32 %v2339_v45, %v113_v19  ;;  %v1254_v2 = vpop.f32.mrb[11].mxu0 }
 0x198   :  { %v1435_v50 = vand.u32 4294901760, %v1434_v30  ;;  %v1447_v52 = vand.u32 4294901760, %v3362_v35  ;;  %v1336_v62 = vand.u32 4294901760, %v1296_v40  ;;  %v2735_v42 = vadd.f32 %v1254_v2, %v108_v31  ;;  %2591 = vmatpush3.bf16.msra.mxu1 %v3364_v46  ;;  %v133_v30 = vpop.permute.xlu1 %132 }
 0x199   :  { %v1455_v0 = vsub.f32 %v3354_v6, %v1454_v53  ;;  %v3372_v16 = vsub.f32 %v1297_v13, %v1339_v56  ;;  %v1299_v17 = vmax.f32 %v2734_v57, 0.0  ;;  %2592 = vmatprep.subr.bf16.mxu1 %v2863_v9  ;;  %v3375_v24 = vpack.c.bf16 %v1428_v34, %v1421_v58 }
 0x19a   :  { %v1448_v1 = vsub.f32 %v3362_v35, %v1447_v52  ;;  %v3380_v7 = vsub.f32 %v1296_v40, %v1336_v62  ;;  %v1298_v8 = vmax.f32 %v2735_v42, 0.0  ;;  %v2342_v11 = vpop.f32.mrb[12].mxu0  ;;  %v3382_v19 = vpack.c.bf16 %v1339_v56, %v1336_v62 }
 0x19b   :  { %v1456_v20 = vand.u32 4294901760, %v1455_v0  ;;  %v3586_v23 = vand.u32 4294901760, %v3372_v16  ;;  %v1345_v27 = vand.u32 4294901760, %v1299_v17  ;;  %v2736_v31 = vadd.f32 %v2342_v11, %v123_v12  ;;  %v1266_v37 = vpop.f32.mrb[13].mxu0  ;;  %v128_v12 = vpop.permute.xlu0 %127 }
 0x19c   :  { %v1449_v38 = vand.u32 4294901760, %v1448_v1  ;;  %v1461_v34 = vand.u32 4294901760, %v3380_v7  ;;  %v1342_v47 = vand.u32 4294901760, %v1298_v8  ;;  %v2737_v58 = vadd.f32 %v1266_v37, %v118_v60  ;;  %2594 = vmatpush3.bf16.msra.mxu1 %v3382_v19 }
 0x19d   :  { %v1469_v3 = vsub.f32 %v3372_v16, %v3586_v23  ;;  %v3390_v4 = vsub.f32 %v1299_v17, %v1345_v27  ;;  %v1301_v5 = vmax.f32 %v2736_v31, 0.0  ;;  %2595 = vmatprep.subr.bf16.mxu1 %v2863_v9  ;;  %v3393_v13 = vpack.c.bf16 %v1442_v48, %v1435_v50 }
 0x19e   :  { %v1462_v40 = vsub.f32 %v3380_v7, %v1461_v34  ;;  %v3398_v45 = vsub.f32 %v1298_v8, %v1342_v47  ;;  %v1300_v56 = vmax.f32 %v2737_v58, 0.0  ;;  %v2345_v57 = vpop.f32.mrb[14].mxu0  ;;  %v3400_v2 = vpack.c.bf16 %v1345_v27, %v1342_v47 }
 0x19f   :  { %v1470_v62 = vand.u32 4294901760, %v1469_v3  ;;  %v1482_v42 = vand.u32 4294901760, %v3390_v4  ;;  %v1351_v60 = vand.u32 4294901760, %v1301_v5  ;;  %v2738_v0 = vadd.f32 %v2345_v57, %v133_v30  ;;  %v1278_v17 = vpop.f32.mrb[15].mxu0 }
 0x1a0   :  { %v1463_v48 = vand.u32 4294901760, %v1462_v40  ;;  %v1475_v50 = vand.u32 4294901760, %v3398_v45  ;;  %v1348_v1 = vand.u32 4294901760, %v1300_v56  ;;  %v2739_v11 = vadd.f32 %v1278_v17, %v128_v12  ;;  %2597 = vmatpush3.bf16.msra.mxu1 %v3400_v2 }
 0x1a1   :  { %v1483_v8 = vsub.f32 %v3390_v4, %v1482_v42  ;;  %v3406_v31 = vsub.f32 %v1301_v5, %v1351_v60  ;;  %v1303_v27 = vmax.f32 %v2738_v0, 0.0  ;;  %2598 = vmatprep.subr.bf16.mxu1 %v2863_v9  ;;  %v2614_v37 = vpack.c.bf16 %v1456_v20, %v1449_v38 }
 0x1a2   :  { %v1476_v47 = vsub.f32 %v3398_v45, %v1475_v50  ;;  %v3410_v58 = vsub.f32 %v1300_v56, %v1348_v1  ;;  %v1302_v3 = vmax.f32 %v2739_v11, 0.0  ;;  %v3412_v30 = vpack.c.bf16 %v1351_v60, %v1348_v1 }
 0x1a3   :  { %v1484_v40 = vand.u32 4294901760, %v1483_v8  ;;  %v1496_v57 = vand.u32 4294901760, %v3406_v31  ;;  %v1357_v12 = vand.u32 4294901760, %v1303_v27  ;;  %v2617_v17 = vpack.c.bf16 %v1470_v62, %v1463_v48 }
 0x1a4   :  { %v1477_v43 = vand.u32 4294901760, %v1476_v47  ;;  %v1489_v5 = vand.u32 4294901760, %v3410_v58  ;;  %v1354_v15 = vand.u32 4294901760, %v1302_v3  ;;  %2600 = vmatpush3.bf16.msra.mxu1 %v3412_v30  ;;  %v2635_v20 = vpack.c.bf16 %v3336_v10, %v3344_v21 }
 0x1a5   :  { %v1497_v38 = vsub.f32 %v3406_v31, %v1496_v57  ;;  %v3420_v56 = vsub.f32 %v1303_v27, %v1357_v12  ;;  %2601 = vmatprep.subr.bf16.mxu1 %v2863_v9  ;;  %v2638_v60 = vpack.c.bf16 %v3354_v6, %v3362_v35  ;;  %v2641_v62 = vpack.c.bf16 %v3372_v16, %v3380_v7 }
 0x1a6   :  { %v1490_v0 = vsub.f32 %v3410_v58, %v1489_v5  ;;  %v1502_v48 = vsub.f32 %v1302_v3, %v1354_v15  ;;  %v3428_v1 = vpack.c.bf16 %v1357_v12, %v1354_v15  ;;  %v2620_v11 = vpack.c.bf16 %v1484_v40, %v1477_v43 }
 0x1a7   :  { %v1498_v8 = vand.u32 4294901760, %v1497_v38  ;;  %v1510_v47 = vand.u32 4294901760, %v3420_v56  ;;  %v2644_v27 = vpack.c.bf16 %v3390_v4, %v3398_v45  ;;  %v2647_v63 = vpack.c.bf16 %v3406_v31, %v3410_v58 }
 0x1a8   :  { %v1491_v14 = vand.u32 4294901760, %v1490_v0  ;;  %v1503_v51 = vand.u32 4294901760, %v1502_v48  ;;  %2603 = vmatpush3.bf16.msra.mxu1 %v3428_v1  ;;  %v2650_v23 = vpack.c.bf16 %v3420_v56, %v1502_v48  ;;  %v3441_v43 = vpack.c.bf16 %v1412_v44, %v1405_v55 }
 0x1a9   :  { %v1511_v15 = vsub.f32 %v3420_v56, %v1510_v47  ;;  %2604 = vmatprep.subr.bf16.mxu1 %v2863_v9  ;;  %v3449_v4 = vpack.c.bf16 %v1426_v61, %v1419_v25  ;;  %v3455_v45 = vpack.c.bf16 %v1440_v36, %v1433_v59  ;;  %v3461_v44 = vpack.c.bf16 %v1454_v53, %v1447_v52 }
 0x1aa   :  { %v1504_v55 = vsub.f32 %v1502_v48, %v1503_v51  ;;  %v2623_v31 = vpack.c.bf16 %v1498_v8, %v1491_v14  ;;  %v3587_v58 = vand.u32 4294901760, %v3372_v16  ;;  %v3469_v25 = vpack.c.bf16 %v1482_v42, %v1475_v50 }
 0x1ab   :  { %v1512_v21 = vand.u32 4294901760, %v1511_v15  ;;  %v3588_v10 = vand.u32 4294901760, %v3305_v32  ;;  %v3473_v36 = vpack.c.bf16 %v1496_v57, %v1489_v5  ;;  %v3475_v59 = vpack.c.bf16 %v1510_v47, %v1503_v51 }
 0x1ac   :  { %v3467_v61 = vpack.c.bf16 %v3587_v58, %v1461_v34  ;;  %v1505_v6 = vand.u32 4294901760, %v1504_v55  ;;  %v3589_v14 = vmov 0.0   ;;  %v3590_v32 = vpack.c.bf16 %v3300_v22, %v3307_v33 }
 0x1ad   :  { %2379 = vmatmul.mubr.f32.vlgmr.msra.gmra.mrb[0].mxu1 %v3588_v10  ;;  %v3591_v51 = vpack.c.bf16 %v3319_v39, %v3326_v54  ;;  %v3592_v22 = vand.u32 4294901760, %v3297_v29 }
 0x1ae   :  { %2606 = vmatpush3.bf16.msra.mxu1 %v3357_v18  ;;  %2413 = vmatprep.mubr.msk.f32.mxu1 %vm2864_vm1, %v3589_v14  ;;  %v2626_v35 = vpack.c.bf16 %v1512_v21, %v1505_v6 }
 0x1af   :  { %2607 = vmatprep.subr.bf16.mxu1 %v2863_v9 }
 0x1b2   :  { %2609 = vmatpush3.bf16.msra.mxu1 %v3375_v24 }
 0x1b3   :  { %2610 = vmatprep.subr.bf16.mxu1 %v2863_v9 }
 0x1b6   :  { %2612 = vmatpush3.bf16.msra.mxu1 %v3393_v13 }
 0x1b7   :  { %2613 = vmatprep.subr.bf16.mxu1 %v2863_v9 }
 0x1ba   :  { %2615 = vmatpush3.bf16.msra.mxu1 %v2614_v37 }
 0x1bb   :  { %2616 = vmatprep.subr.bf16.mxu1 %v2863_v9 }
 0x1be   :  { %2618 = vmatpush3.bf16.msra.mxu1 %v2617_v17 }
 0x1bf   :  { %2619 = vmatprep.subr.bf16.mxu1 %v2863_v9 }
 0x1c2   :  { %2621 = vmatpush3.bf16.msra.mxu1 %v2620_v11 }
 0x1c3   :  { %2622 = vmatprep.subr.bf16.mxu1 %v2863_v9 }
 0x1c6   :  { %2624 = vmatpush3.bf16.msra.mxu1 %v2623_v31 }
 0x1c7   :  { %2625 = vmatprep.subr.bf16.mxu1 %v2863_v9 }
 0x1ca   :  { %2627 = vmatpush3.bf16.msra.mxu1 %v2626_v35 }
 0x1cb   :  { %2628 = vmatprep.subr.bf16.mxu1 %v2863_v9 }
 0x1cd   :  { %2414 = vmatmul.mubr.f32.vlgmr.msra.gmra.mrb[0].mxu1 %v3294_v26 }
 0x1ce   :  { %2630 = vmatpush3.bf16.msra.mxu1 %v3590_v32  ;;  %2448 = vmatprep.mubr.msk.f32.mxu1 %vm2864_vm1, %v3589_v14 }
 0x1cf   :  { %2631 = vmatprep.subr.bf16.mxu1 %v2863_v9 }
 0x1d2   :  { %2633 = vmatpush3.bf16.msra.mxu1 %v3591_v51 }
 0x1d3   :  { %2634 = vmatprep.subr.bf16.mxu1 %v2863_v9 }
 0x1d6   :  { %2636 = vmatpush3.bf16.msra.mxu1 %v2635_v20 }
 0x1d7   :  { %2637 = vmatprep.subr.bf16.mxu1 %v2863_v9 }
 0x1da   :  { %2639 = vmatpush3.bf16.msra.mxu1 %v2638_v60 }
 0x1db   :  { %2640 = vmatprep.subr.bf16.mxu1 %v2863_v9 }
 0x1de   :  { %2642 = vmatpush3.bf16.msra.mxu1 %v2641_v62 }
 0x1df   :  { %2643 = vmatprep.subr.bf16.mxu1 %v2863_v9 }
 0x1e2   :  { %2645 = vmatpush3.bf16.msra.mxu1 %v2644_v27 }
 0x1e3   :  { %2646 = vmatprep.subr.bf16.mxu1 %v2863_v9 }
 0x1e6   :  { %2648 = vmatpush3.bf16.msra.mxu1 %v2647_v63 }
 0x1e7   :  { %2649 = vmatprep.subr.bf16.mxu1 %v2863_v9 }
 0x1ea   :  { %2651 = vmatpush3.bf16.msra.mxu1 %v2650_v23 }
 0x1eb   :  { %2652 = vmatprep.subr.bf16.mxu1 %v2863_v9 }
 0x1ed   :  { %2449 = vmatmul.mubr.f32.vlgmr.msra.gmra.mrb[0].mxu1 %v3297_v29  ;;  %v1309_v29 = vpop.permute.xlu0 %1308 }
 0x1ee   :  { %2654 = vmatpush3.bf16.msra.mxu1 %v3309_v41  ;;  %2483 = vmatprep.mubr.msk.f32.mxu1 %vm2864_vm1, %v3589_v14 }
 0x1ef   :  { %2655 = vmatprep.subr.bf16.mxu1 %v2863_v9 }
 0x1f2   :  { %2657 = vmatpush3.bf16.msra.mxu1 %v3328_v49 }
 0x1f3   :  { %2658 = vmatprep.subr.bf16.mxu1 %v2863_v9 }
 0x1f6   :  { %2660 = vmatpush3.bf16.msra.mxu1 %v3346_v28 }
 0x1f7   :  { %2661 = vmatprep.subr.bf16.mxu1 %v2863_v9 }
 0x1fa   :  { %2663 = vmatpush3.bf16.msra.mxu1 %v3364_v46 }
 0x1fb   :  { %2664 = vmatprep.subr.bf16.mxu1 %v2863_v9 }
 0x1fe   :  { %2666 = vmatpush3.bf16.msra.mxu1 %v3382_v19 }
 0x1ff   :  { %2667 = vmatprep.subr.bf16.mxu1 %v2863_v9 }
 0x202   :  { %2669 = vmatpush3.bf16.msra.mxu1 %v3400_v2 }
 0x203   :  { %2670 = vmatprep.subr.bf16.mxu1 %v2863_v9 }
 0x206   :  { %2672 = vmatpush3.bf16.msra.mxu1 %v3412_v30 }
 0x207   :  { %2673 = vmatprep.subr.bf16.mxu1 %v2863_v9 }
 0x20a   :  { %2675 = vmatpush3.bf16.msra.mxu1 %v3428_v1 }
 0x20b   :  { %2676 = vmatprep.subr.bf16.mxu1 %v2863_v9 }
 0x20d   :  { %2484 = vmatmul.mubr.f32.vlgmr.msra.gmra.mrb[0].mxu1 %v3592_v22 }
 0x20e   :  { %2678 = vmatpush3.bf16.msra.mxu1 %v3441_v43  ;;  %2518 = vmatprep.mubr.msk.f32.mxu1 %vm2864_vm1, %v3589_v14 }
 0x20f   :  { %2679 = vmatprep.subr.bf16.mxu1 %v2863_v9 }
 0x212   :  { %2681 = vmatpush3.bf16.msra.mxu1 %v3449_v4 }
 0x213   :  { %2682 = vmatprep.subr.bf16.mxu1 %v2863_v9 }
 0x216   :  { %2684 = vmatpush3.bf16.msra.mxu1 %v3455_v45 }
 0x217   :  { %2685 = vmatprep.subr.bf16.mxu1 %v2863_v9 }
 0x21a   :  { %2687 = vmatpush3.bf16.msra.mxu1 %v3461_v44 }
 0x21b   :  { %2688 = vmatprep.subr.bf16.mxu1 %v2863_v9 }
 0x21e   :  { %2690 = vmatpush3.bf16.msra.mxu1 %v3467_v61 }
 0x21f   :  { %2691 = vmatprep.subr.bf16.mxu1 %v2863_v9 }
 0x222   :  { %2693 = vmatpush3.bf16.msra.mxu1 %v3469_v25 }
 0x223   :  { %2694 = vmatprep.subr.bf16.mxu1 %v2863_v9 }
 0x226   :  { %2696 = vmatpush3.bf16.msra.mxu1 %v3473_v36 }
 0x227   :  { %2697 = vmatprep.subr.bf16.mxu1 %v2863_v9 }
 0x22a   :  { %2699 = vmatpush3.bf16.msra.mxu1 %v3475_v59 }
 0x22b   :  { %2700 = vmatprep.subr.bf16.mxu1 %v2863_v9 }
 0x22d   :  { %2519 = vmatmul.mubr.f32.vlgmr.msra.gmra.mrb[0].mxu1 %v3294_v26 }
 0x22e   :  { %2702 = vmatpush3.bf16.msra.mxu1 %v3309_v41  ;;  %2553 = vmatprep.mubr.msk.f32.mxu1 %vm2864_vm1, %v3589_v14 }
 0x22f   :  { %2703 = vmatprep.subr.bf16.mxu1 %v2863_v9 }
 0x232   :  { %2705 = vmatpush3.bf16.msra.mxu1 %v3328_v49 }
 0x233   :  { %2706 = vmatprep.subr.bf16.mxu1 %v2863_v9 }
 0x236   :  { %2708 = vmatpush3.bf16.msra.mxu1 %v3346_v28 }
 0x237   :  { %2709 = vmatprep.subr.bf16.mxu1 %v2863_v9 }
 0x23a   :  { %2711 = vmatpush3.bf16.msra.mxu1 %v3364_v46 }
 0x23b   :  { %2712 = vmatprep.subr.bf16.mxu1 %v2863_v9 }
 0x23e   :  { %2714 = vmatpush3.bf16.msra.mxu1 %v3382_v19 }
 0x23f   :  { %2715 = vmatprep.subr.bf16.mxu1 %v2863_v9 }
 0x242   :  { %2717 = vmatpush3.bf16.msra.mxu1 %v3400_v2 }
 0x243   :  { %2718 = vmatprep.subr.bf16.mxu1 %v2863_v9 }
 0x246   :  { %2720 = vmatpush3.bf16.msra.mxu1 %v3412_v30 }
 0x247   :  { %2721 = vmatprep.subr.bf16.mxu1 %v2863_v9 }
 0x24a   :  { %2723 = vmatpush3.bf16.msra.mxu1 %v3428_v1 }
 0x24d   :  { %2554 = vmatmul.mubr.f32.vlgmr.msra.gmra.mrb[0].mxu1 %v3294_v26 }
 0x320   :  { %v1948_v33 = vpop.f32.mrb[0].mxu1 }
 0x321   :  { %v2740_v41 = vadd.f32 %v1948_v33, %v1309_v29  ;;  %v2555_v63 = vpop.f32.mrb[1].mxu1 }
 0x323   :  { %v1952_v39 = vmax.f32 %v2740_v41, 0.0 }
 0x325   :  { %1953 = vst [vmem:[#allocation2] sm:$0xff] %v1952_v39 }
 0x326   :  { %2849 = shalt.err (!%p2846_p4)
}
 0x327   :  { %s2850_s12 = scalar_lea.hbm %s3582_s5, 128 }
 0x328   :  { %p2851_p5 = scmp.ne.s32.totalorder %s3582_s5, %s2850_s12  ;;  %p2854_p6 = scmp.lt.u32.totalorder %s2850_s12, %s3582_s5 }
 0x32a   :  { %p2856_p7 = pnand %p2854_p6, %p2851_p5 }
 0x32c   :  { %2859 = shalt.err (!%p2856_p7)
}
 0x32d   :  { %1963 = dma.vmem_to_hbm [thread:$0]  %s1961_s8, 128, %s3582_s5, [#allocation3]  }
 0x32e   :  { %2860 = dma.done.wait [#allocation3], 128  }
 0x32f   :  { %2861 = vsyncadd [#allocation3], 4294967168 }
 0x330   :  { %1967 = vsyncpa [#allocation3], 1 }

</bundles_post_ra>
